<compile_context>
chip_gen: v6e
topology: v6e:2x2x1
jax: 0.10.0
libtpu: 0.0.40
codegen_flags: <defaults>
</compile_context>

<pallas_src>
import jax
import jax.numpy as jnp
from jax.experimental import pallas as pl
from jax.experimental.pallas import tpu as pltpu


def _make_kernel(y_outer_product):
    """Build the 3-layer MLP kernel; the concat is folded into a split matmul."""

    def kernel(x_ref, y_ref, w1x_ref, w1y_ref, b1_ref,
               w2_ref, b2_ref, w3_ref, b3_ref, out_ref):
        x = x_ref[...]                                            # [TB, in_size]
        y = y_ref[...]                                            # [TB, out_size]
        # Layer 1: cat([x, y]) @ W1 == x @ W1[:in] + y @ W1[in:]
        h1 = jnp.dot(x, w1x_ref[...], preferred_element_type=jnp.float32)
        if y_outer_product:
            # out_size == 1: [TB,1] x [1,H] is an outer product; a VPU broadcast
            # multiply avoids a useless MXU push/pop on an otherwise-idle slot.
            h1 = h1 + y * w1y_ref[...]
        else:
            h1 = h1 + jnp.dot(y, w1y_ref[...],
                              preferred_element_type=jnp.float32)
        h1 = jnp.maximum(h1 + b1_ref[...], 0.0)                   # ReLU
        # Layer 2
        h2 = jnp.dot(h1, w2_ref[...],
                     preferred_element_type=jnp.float32) + b2_ref[...]
        h2 = jnp.maximum(h2, 0.0)                                 # ReLU
        # Layer 3 (unpadded: n_out columns, masked store is cheap vs 64x HBM traffic)
        out = jnp.dot(h2, w3_ref[...],
                      preferred_element_type=jnp.float32) + b3_ref[...]
        out_ref[...] = out.astype(out_ref.dtype)

    return kernel


def prepare_params(params, input_size):
    """One-time preprocessing: split W1 row-wise so no per-call XLA slice ops."""
    w1, b1, w2, b2, w3, b3 = params
    w1x = w1[:input_size]                                         # [in_size, hidden]
    w1y = w1[input_size:]                                         # [out_size, hidden]
    return (w1x, w1y, b1, w2, b2, w3, b3)


def cvae_encoder_forward(x, y, prepared_params, *,
                         max_batch_tile=4096,
                         min_grid_steps=1,      # set to 2 on v7x (2 TensorCores)
                         small_batch_threshold=0):
    """Pallas wrapper. x: [B, input_size], y: [B, output_size]."""
    w1x, w1y, b1, w2, b2, w3, b3 = prepared_params
    B, in_size = x.shape
    out_size = y.shape[1]
    hidden = w1x.shape[1]
    n_out = w3.shape[1]

    # Optional small-batch fast path: for tiny B the launch/padding overhead of
    # a pallas_call dwarfs <1 KFLOP of math; let XLA fuse it instead.
    if B <= small_batch_threshold:
        h1 = jnp.maximum(x @ w1x + y @ w1y + b1, 0.0)
        h2 = jnp.maximum(h1 @ w2 + b2, 0.0)
        return h2 @ w3 + b3

    # Balanced batch tiles: number of tiles first, then round the per-tile size
    # up to a sublane multiple, so tail padding is bounded by 7 rows (not ~tb).
    num_tiles = max(int(min_grid_steps), -(-B // max_batch_tile))
    tb = -(-B // num_tiles)
    tb = ((tb + 7) // 8) * 8
    B_pad = num_tiles * tb
    if B_pad != B:
        x = jnp.pad(x, ((0, B_pad - B), (0, 0)))
        y = jnp.pad(y, ((0, B_pad - B), (0, 0)))
    grid = (num_tiles,)

    # Double-buffered lane-padded activations: ~6 * tb * 512 B.  Cover that plus
    # headroom explicitly so v5e's 16 MiB default scoped limit is not a problem,
    # while staying far under v7x's 64 MiB physical VMEM.
    vmem_limit = min(max(24 << 20, 8 * tb * 512), 48 << 20)

    kernel = _make_kernel(out_size == 1)

    out = pl.pallas_call(
        kernel,
        out_shape=jax.ShapeDtypeStruct((B_pad, n_out), jnp.float32),
        grid_spec=pltpu.PrefetchScalarGridSpec(
            num_scalar_prefetch=0,
            grid=grid,
            in_specs=[
                pl.BlockSpec((tb, in_size), lambda i: (i, 0)),        # x tile
                pl.BlockSpec((tb, out_size), lambda i: (i, 0)),       # y tile
                pl.BlockSpec((in_size, hidden), lambda i: (0, 0)),    # W1[:in]
                pl.BlockSpec((out_size, hidden), lambda i: (0, 0)),   # W1[in:]
                pl.BlockSpec((1, hidden), lambda i: (0, 0)),          # b1
                pl.BlockSpec((hidden, hidden), lambda i: (0, 0)),     # W2
                pl.BlockSpec((1, hidden), lambda i: (0, 0)),          # b2
                pl.BlockSpec((hidden, n_out), lambda i: (0, 0)),      # W3
                pl.BlockSpec((1, n_out), lambda i: (0, 0)),           # b3
            ],
            out_specs=pl.BlockSpec((tb, n_out), lambda i: (i, 0)),
        ),
        compiler_params=pltpu.CompilerParams(
            dimension_semantics=("parallel",),   # shards batch tiles on v7x 2 TCs
            vmem_limit_bytes=int(vmem_limit)),
    )(x, y, w1x, w1y, b1, w2, b2, w3, b3)

    return out if B_pad == B else out[:B]


def init_params(key, input_size=8, output_size=1, hidden_size=5, num_latent=1):
    """Deterministic synthetic parameters (same shapes as the nn.Module)."""
    f_in = input_size + output_size
    ks = jax.random.split(key, 6)
    w1 = jax.random.normal(ks[0], (f_in, hidden_size), jnp.float32) * 0.1
    b1 = jax.random.normal(ks[1], (1, hidden_size), jnp.float32) * 0.1
    w2 = jax.random.normal(ks[2], (hidden_size, hidden_size), jnp.float32) * 0.1
    b2 = jax.random.normal(ks[3], (1, hidden_size), jnp.float32) * 0.1
    w3 = jax.random.normal(ks[4], (hidden_size, num_latent * 2), jnp.float32) * 0.1
    b3 = jax.random.normal(ks[5], (1, num_latent * 2), jnp.float32) * 0.1
    return (w1, b1, w2, b2, w3, b3)


def reference_forward(x, y, params):
    """Pure-JAX reference mirroring the PyTorch forward."""
    w1, b1, w2, b2, w3, b3 = params
    xx = jnp.concatenate([x, y], axis=1)
    h1 = jnp.maximum(xx @ w1 + b1, 0.0)
    h2 = jnp.maximum(h1 @ w2 + b2, 0.0)
    return h2 @ w3 + b3


if __name__ == "__main__":
    key = jax.random.PRNGKey(0)
    k_x, k_y, k_p = jax.random.split(key, 3)

    batch = 16
    input_size, output_size, hidden_size, num_latent = 8, 1, 5, 1

    x = jax.random.normal(k_x, (batch, input_size), jnp.float32)
    y = jax.random.normal(k_y, (batch, output_size), jnp.float32)
    params = init_params(k_p, input_size, output_size, hidden_size, num_latent)
    prepared = prepare_params(params, input_size)

    # small_batch_threshold=0 forces the Pallas path so the kernel is exercised.
    out = cvae_encoder_forward(x, y, prepared, small_batch_threshold=0)
    out = jax.block_until_ready(out)

    ref = reference_forward(x, y, params)
    assert out.shape == (batch, num_latent * 2), out.shape
    assert jnp.allclose(out, ref, atol=1e-5, rtol=1e-5), \
        f"max abs err {jnp.max(jnp.abs(out - ref))}"

    print("KERNEL_OK")
</pallas_src>

<mosaic_0001>
module attributes {stable_mosaic.version = 11 : i64} {
  func.func @kernel(%arg0: i32, %arg1: memref<16x8xf32, #tpu.memory_space<vmem>>, %arg2: memref<16x1xf32, #tpu.memory_space<vmem>>, %arg3: memref<8x5xf32, #tpu.memory_space<vmem>>, %arg4: memref<1x5xf32, #tpu.memory_space<vmem>>, %arg5: memref<1x5xf32, #tpu.memory_space<vmem>>, %arg6: memref<5x5xf32, #tpu.memory_space<vmem>>, %arg7: memref<1x5xf32, #tpu.memory_space<vmem>>, %arg8: memref<5x2xf32, #tpu.memory_space<vmem>>, %arg9: memref<1x2xf32, #tpu.memory_space<vmem>>, %arg10: memref<16x2xf32, #tpu.memory_space<vmem>>) attributes {dimension_semantics = [#tpu.dimension_semantics<parallel>], iteration_bounds = array<i64: 1>, scalar_prefetch = 0 : i64, scratch_operands = 0 : i64, tpu.core_type = #tpu.core_type<tc>, window_params = [{transform_indices = @transform_0, window_bounds = array<i64: 16, 8>}, {transform_indices = @transform_1, window_bounds = array<i64: 16, 1>}, {pipeline_mode = #tpu.pipeline_mode<synchronous>, transform_indices = @transform_2, window_bounds = array<i64: 8, 5>}, {pipeline_mode = #tpu.pipeline_mode<synchronous>, transform_indices = @transform_3, window_bounds = array<i64: 1, 5>}, {pipeline_mode = #tpu.pipeline_mode<synchronous>, transform_indices = @transform_4, window_bounds = array<i64: 1, 5>}, {pipeline_mode = #tpu.pipeline_mode<synchronous>, transform_indices = @transform_5, window_bounds = array<i64: 5, 5>}, {pipeline_mode = #tpu.pipeline_mode<synchronous>, transform_indices = @transform_6, window_bounds = array<i64: 1, 5>}, {pipeline_mode = #tpu.pipeline_mode<synchronous>, transform_indices = @transform_7, window_bounds = array<i64: 5, 2>}, {pipeline_mode = #tpu.pipeline_mode<synchronous>, transform_indices = @transform_8, window_bounds = array<i64: 1, 2>}, {transform_indices = @transform_9, window_bounds = array<i64: 16, 2>}]} {
    %c0 = arith.constant 0 : index
    %c0_0 = arith.constant 0 : index
    %0 = vector.load %arg1[%c0, %c0_0] : memref<16x8xf32, #tpu.memory_space<vmem>>, vector<16x8xf32>
    %c0_1 = arith.constant 0 : index
    %c0_2 = arith.constant 0 : index
    %1 = vector.load %arg2[%c0_1, %c0_2] : memref<16x1xf32, #tpu.memory_space<vmem>>, vector<16x1xf32>
    %c0_3 = arith.constant 0 : index
    %c0_4 = arith.constant 0 : index
    %2 = vector.load %arg3[%c0_3, %c0_4] : memref<8x5xf32, #tpu.memory_space<vmem>>, vector<8x5xf32>
    %cst = arith.constant dense<0.000000e+00> : vector<16x5xf32>
    %3 = tpu.matmul %0, %2, %cst {dimension_numbers = #tpu.dot_dimension_numbers<[1], [0], [0], [1], [0, 0, 1, 1], [], []>} : vector<16x8xf32>, vector<8x5xf32>, vector<16x5xf32> -> vector<16x5xf32>
    %c0_5 = arith.constant 0 : index
    %c0_6 = arith.constant 0 : index
    %4 = vector.load %arg4[%c0_5, %c0_6] : memref<1x5xf32, #tpu.memory_space<vmem>>, vector<1x5xf32>
    %5 = vector.broadcast %1 : vector<16x1xf32> to vector<16x5xf32>
    %6 = vector.broadcast %4 : vector<1x5xf32> to vector<16x5xf32>
    %7 = arith.mulf %5, %6 : vector<16x5xf32>
    %8 = arith.addf %3, %7 : vector<16x5xf32>
    %c0_7 = arith.constant 0 : index
    %c0_8 = arith.constant 0 : index
    %9 = vector.load %arg5[%c0_7, %c0_8] : memref<1x5xf32, #tpu.memory_space<vmem>>, vector<1x5xf32>
    %10 = vector.broadcast %9 : vector<1x5xf32> to vector<16x5xf32>
    %11 = arith.addf %8, %10 : vector<16x5xf32>
    %cst_9 = arith.constant 0.000000e+00 : f32
    %12 = vector.broadcast %cst_9 : f32 to vector<16x5xf32>
    %13 = arith.maximumf %11, %12 : vector<16x5xf32>
    %c0_10 = arith.constant 0 : index
    %c0_11 = arith.constant 0 : index
    %14 = vector.load %arg6[%c0_10, %c0_11] : memref<5x5xf32, #tpu.memory_space<vmem>>, vector<5x5xf32>
    %cst_12 = arith.constant dense<0.000000e+00> : vector<16x5xf32>
    %15 = tpu.matmul %13, %14, %cst_12 {dimension_numbers = #tpu.dot_dimension_numbers<[1], [0], [0], [1], [0, 0, 1, 1], [], []>} : vector<16x5xf32>, vector<5x5xf32>, vector<16x5xf32> -> vector<16x5xf32>
    %c0_13 = arith.constant 0 : index
    %c0_14 = arith.constant 0 : index
    %16 = vector.load %arg7[%c0_13, %c0_14] : memref<1x5xf32, #tpu.memory_space<vmem>>, vector<1x5xf32>
    %17 = vector.broadcast %16 : vector<1x5xf32> to vector<16x5xf32>
    %18 = arith.addf %15, %17 : vector<16x5xf32>
    %cst_15 = arith.constant 0.000000e+00 : f32
    %19 = vector.broadcast %cst_15 : f32 to vector<16x5xf32>
    %20 = arith.maximumf %18, %19 : vector<16x5xf32>
    %c0_16 = arith.constant 0 : index
    %c0_17 = arith.constant 0 : index
    %21 = vector.load %arg8[%c0_16, %c0_17] : memref<5x2xf32, #tpu.memory_space<vmem>>, vector<5x2xf32>
    %cst_18 = arith.constant dense<0.000000e+00> : vector<16x2xf32>
    %22 = tpu.matmul %20, %21, %cst_18 {dimension_numbers = #tpu.dot_dimension_numbers<[1], [0], [0], [1], [0, 0, 1, 1], [], []>} : vector<16x5xf32>, vector<5x2xf32>, vector<16x2xf32> -> vector<16x2xf32>
    %c0_19 = arith.constant 0 : index
    %c0_20 = arith.constant 0 : index
    %23 = vector.load %arg9[%c0_19, %c0_20] : memref<1x2xf32, #tpu.memory_space<vmem>>, vector<1x2xf32>
    %24 = vector.broadcast %23 : vector<1x2xf32> to vector<16x2xf32>
    %25 = arith.addf %22, %24 : vector<16x2xf32>
    %c0_21 = arith.constant 0 : index
    %c0_22 = arith.constant 0 : index
    %26 = vector.load %arg10[%c0_21, %c0_22] : memref<16x2xf32, #tpu.memory_space<vmem>>, vector<16x2xf32>
    tpu.vector_store %arg10[%c0_21, %c0_22], %25 {strides = array<i32>} : memref<16x2xf32, #tpu.memory_space<vmem>>, vector<16x2xf32>,
    return
  }
  func.func @transform_0(%arg0: i32) -> (i32, i32) {
    %c0_i32 = arith.constant 0 : i32
    %c0_i32_0 = arith.constant 0 : i32
    return %arg0, %c0_i32 : i32, i32
  }
  func.func @transform_1(%arg0: i32) -> (i32, i32) {
    %c0_i32 = arith.constant 0 : i32
    %c0_i32_0 = arith.constant 0 : i32
    return %arg0, %c0_i32 : i32, i32
  }
  func.func @transform_2(%arg0: i32) -> (i32, i32) {
    %c0_i32 = arith.constant 0 : i32
    %c0_i32_0 = arith.constant 0 : i32
    %c0_i32_1 = arith.constant 0 : i32
    return %c0_i32, %c0_i32_0 : i32, i32
  }
  func.func @transform_3(%arg0: i32) -> (i32, i32) {
    %c0_i32 = arith.constant 0 : i32
    %c0_i32_0 = arith.constant 0 : i32
    %c0_i32_1 = arith.constant 0 : i32
    return %c0_i32, %c0_i32_0 : i32, i32
  }
  func.func @transform_4(%arg0: i32) -> (i32, i32) {
    %c0_i32 = arith.constant 0 : i32
    %c0_i32_0 = arith.constant 0 : i32
    %c0_i32_1 = arith.constant 0 : i32
    return %c0_i32, %c0_i32_0 : i32, i32
  }
  func.func @transform_5(%arg0: i32) -> (i32, i32) {
    %c0_i32 = arith.constant 0 : i32
    %c0_i32_0 = arith.constant 0 : i32
    %c0_i32_1 = arith.constant 0 : i32
    return %c0_i32, %c0_i32_0 : i32, i32
  }
  func.func @transform_6(%arg0: i32) -> (i32, i32) {
    %c0_i32 = arith.constant 0 : i32
    %c0_i32_0 = arith.constant 0 : i32
    %c0_i32_1 = arith.constant 0 : i32
    return %c0_i32, %c0_i32_0 : i32, i32
  }
  func.func @transform_7(%arg0: i32) -> (i32, i32) {
    %c0_i32 = arith.constant 0 : i32
    %c0_i32_0 = arith.constant 0 : i32
    %c0_i32_1 = arith.constant 0 : i32
    return %c0_i32, %c0_i32_0 : i32, i32
  }
  func.func @transform_8(%arg0: i32) -> (i32, i32) {
    %c0_i32 = arith.constant 0 : i32
    %c0_i32_0 = arith.constant 0 : i32
    %c0_i32_1 = arith.constant 0 : i32
    return %c0_i32, %c0_i32_0 : i32, i32
  }
  func.func @transform_9(%arg0: i32) -> (i32, i32) {
    %c0_i32 = arith.constant 0 : i32
    %c0_i32_0 = arith.constant 0 : i32
    return %arg0, %c0_i32 : i32, i32
  }
}

</mosaic_0001>

<bundles_post_ra>
// kernel: tpu_custom_call.1
= control target key start
LH: loop header
LB: loop body
LE: loop exit
PB: predicated region body
PF: predicated region fallthrough
CT: control target
= control target key end

     0   :  { %vm56_vm0 = vcmask 64512   ;;  %v382_v3 = vmov 0   ;;  %vm164_vm1 = vcmask 1044480   ;;  %vm157_vm2 = vcmask 39936   ;;  %s480_s2 = inlined_call_operand.vmem [shape: f32[8,5], index: 2, kind: input, shape index: {}]   ;;  %s481_s0 = inlined_call_operand.vmem [shape: f32[16,8], index: 0, kind: input, shape index: {}]   ;;  %s482_s1 = inlined_call_operand.vmem [shape: f32[16,1], index: 1, kind: input, shape index: {}]   ;;  %s483_s5 = inlined_call_operand.vmem [shape: f32[5,5], index: 5, kind: input, shape index: {}]   ;;  %s484_s3 = inlined_call_operand.vmem [shape: f32[1,5], index: 3, kind: input, shape index: {}]   ;;  %s485_s4 = inlined_call_operand.vmem [shape: f32[1,5], index: 4, kind: input, shape index: {}]   ;;  %s486_s7 = inlined_call_operand.vmem [shape: f32[5,2], index: 7, kind: input, shape index: {}]   ;;  %s487_s6 = inlined_call_operand.vmem [shape: f32[1,5], index: 6, kind: input, shape index: {}]   ;;  %s488_s8 = inlined_call_operand.vmem [shape: f32[1,2], index: 8, kind: input, shape index: {}]   ;;  %s489_s9 = inlined_call_operand.vmem [shape: f32[16,2], index: 9, kind: output, shape index: {}]  }
   0x1   :  { %v36_v0 = vld [vmem:[%s480_s2] sm:$0xff]  ;;  %v33_v2 = vld [vmem:[%s481_s0 + $0x8] sm:$0xff]  ;;  %381 = vset.pattern.permute.xlu0 %v382_v3  ;;  %vm337_vm3 = vcmask 15360  }
   0x2   :  { %v32_v1 = vld [vmem:[%s481_s0] sm:$0xff]  ;;  %365 = vmatprep.subr.mxu0 %v36_v0  ;;  %v35_v5 = vld [vmem:[%s482_s1 + $0x8] sm:$0xff] }
   0x3   :  { %367 = vmatprep.mubr.msk.f32.mxu0 %vm56_vm0, %v32_v1  ;;  %v34_v4 = vld [vmem:[%s482_s1] sm:$0xff]  ;;  %366 = vmatpush3.msra.mxu0 %v36_v0 }
   0x4   :  { %40 = vperm.xlu0 %381, %v34_v4   ;;  %368 = vmatmul.mubr.msk.f32.vlgmr.msra.gmra.mxu0 %vm56_vm0, %v33_v2  ;;  %v149_v6 = vld [vmem:[%s483_s5] sm:$0x1f] }
   0x5   :  { %370 = vmatprep.subr.msk.mxu1 %vm164_vm1, %v149_v6  ;;  %v344_v8 = vld [vmem:[%s484_s3] ss:$0 sm:$0xff] }
   0x6   :  { %371 = vmatpush3.msk.msra.mxu1 %vm164_vm1, %v149_v6  ;;  %v347_v14 = vld [vmem:[%s485_s4] ss:$0 sm:$0xff] }
   0x7   :  { %v245_v21 = vld [vmem:[%s486_s7] sm:$0x1f] }
   0x8   :  { %45 = vperm.xlu0 %381, %v35_v5   ;;  %375 = vmatprep.subr.msk.mxu0 %vm164_vm1, %v245_v21  ;;  %v348_v22 = vld [vmem:[%s487_s6] ss:$0 sm:$0xff] }
   0x9   :  { %376 = vmatpush3.msk.msra.mxu0 %vm164_vm1, %v245_v21  ;;  %v352_v29 = vld [vmem:[%s488_s8] ss:$0 sm:$0xff] }
  0x7f   :  { %v41_v7 = vpop.permute.xlu0 %40 }
  0x80   :  { %v54_v12 = vmul.f32 %v344_v8, %v41_v7 }
  0x83   :  { %v46_v9 = vpop.permute.xlu0 %45 }
  0x84   :  { %v55_v10 = vmul.f32 %v344_v8, %v46_v9 }
  0xc4   :  { %v369_v11 = vpop.f32.mrf.mxu0 }
  0xc5   :  { %v135_v13 = vadd.f32 %v369_v11, %v55_v10 }
  0xc6   :  { %v129_v15 = vpop.f32.mrf.mxu0 }
  0xc7   :  { %v130_v16 = vadd.f32 %v129_v15, %v54_v12  ;;  %v146_v17 = vadd.f32 %v347_v14, %v135_v13 }
  0xc9   :  { %v145_v18 = vadd.f32 %v347_v14, %v130_v16  ;;  %v148_v20 = vmax.f32 %v146_v17, 0.0 }
  0xcb   :  { %v147_v19 = vmax.f32 %v145_v18, 0.0 }
  0xcd   :  { %372 = vmatprep.mubr.msk.f32.mxu1 %vm157_vm2, %v147_v19 }
  0xce   :  { %373 = vmatmul.mubr.msk.f32.vlgmr.msra.gmra.mxu1 %vm157_vm2, %v148_v20 }
 0x18e   :  { %v374_v23 = vpop.f32.mrf.mxu1 }
 0x18f   :  { %v240_v24 = vadd.f32 %v374_v23, %v348_v22 }
 0x190   :  { %v234_v25 = vpop.f32.mrf.mxu1 }
 0x191   :  { %v235_v26 = vadd.f32 %v348_v22, %v234_v25  ;;  %v244_v28 = vmax.f32 %v240_v24, 0.0 }
 0x193   :  { %v243_v27 = vmax.f32 %v235_v26, 0.0 }
 0x195   :  { %377 = vmatprep.mubr.msk.f32.mxu0 %vm157_vm2, %v243_v27 }
 0x196   :  { %378 = vmatmul.mubr.msk.f32.vlgmr.msra.gmra.mxu0 %vm157_vm2, %v244_v28 }
 0x256   :  { %v379_v30 = vpop.f32.mrf.mxu0 }
 0x257   :  { %v334_v31 = vadd.f32 %v379_v30, %v352_v29 }
 0x258   :  { %v328_v32 = vpop.f32.mrf.mxu0 }
 0x259   :  { %339 = vst.msk [vmem:[%s489_s9 + $0x8] sm:$0xff] %vm337_vm3, %v334_v31  ;;  %v329_v33 = vadd.f32 %v352_v29, %v328_v32 }
 0x25b   :  { %338 = vst.msk [vmem:[%s489_s9] sm:$0xff] %vm337_vm3, %v329_v33 }

</bundles_post_ra>
